<compile_context>
chip_gen: v7x
topology: tpu7x:2x2x1
jax: 0.10.0
libtpu: 0.0.40
codegen_flags: <defaults>
</compile_context>

<pallas_src>
import functools

import jax
import jax.numpy as jnp
from jax.experimental import pallas as pl
from jax.experimental.pallas import tpu as pltpu


def _round_up(x: int, m: int) -> int:
    return (x + m - 1) // m * m


# ------------------------------ fused kernel ---------------------------------


@functools.lru_cache(maxsize=None)
def _make_fused_kernel(hidden_dims: tuple, n_genes: int):
    """Kernel computing TWO MLPs (mean-net, theta-net) sharing one input, with
    per-layer weights fused along the output-feature axis.

    Ref order: x, [W, b, gamma, beta] * n_hidden, W_last, b_last, out
    Output columns [0, n_genes)      -> softplus(mean-net)
    Output columns [n_genes, n_out)  -> exp(softplus(theta-net))  (+ zero padding)
    """
    n_hidden = len(hidden_dims)

    def _fused_layernorm(h, hd):
        # Independent LayerNorm over each half of the fused feature axis, done
        # with lane masks (no lane slicing / concatenation inside the kernel).
        col = jax.lax.broadcasted_iota(jnp.int32, h.shape, 1)
        second = col >= hd
        inv = 1.0 / float(hd)
        mu1 = jnp.sum(jnp.where(second, 0.0, h), axis=-1, keepdims=True) * inv
        mu2 = jnp.sum(jnp.where(second, h, 0.0), axis=-1, keepdims=True) * inv
        d = h - jnp.where(second, mu2, mu1)
        v1 = jnp.sum(jnp.where(second, 0.0, d * d), axis=-1, keepdims=True) * inv
        v2 = jnp.sum(jnp.where(second, d * d, 0.0), axis=-1, keepdims=True) * inv
        var = jnp.where(second, v2, v1)
        return d * jax.lax.rsqrt(var + 1e-5)

    def kernel(*refs):
        x_ref = refs[0]
        out_ref = refs[-1]

        h = x_ref[...].astype(jnp.float32)
        idx = 1
        for li in range(n_hidden):
            w = refs[idx][...]          # bf16  (K, 2*hd)
            b = refs[idx + 1][...]      # f32   (1, 2*hd)
            g = refs[idx + 2][...]      # f32
            be = refs[idx + 3][...]     # f32
            idx += 4
            # Linear: bf16 MXU operands, f32 accumulation.
            h = jnp.dot(h.astype(jnp.bfloat16), w,
                        preferred_element_type=jnp.float32) + b
            # LayerNorm (per-net halves) + affine + ReLU, all in f32.
            h = _fused_layernorm(h, hidden_dims[li])
            h = jnp.maximum(h * g + be, 0.0)
            # TODO(synk): training-mode Dropout (stateful RNG mask) not implemented;
            # eval-mode identity semantics only.

        w = refs[idx][...]
        b = refs[idx + 1][...]
        y = jnp.dot(h.astype(jnp.bfloat16), w,
                    preferred_element_type=jnp.float32) + b

        # Epilogue: softplus(threshold=20) for the mean half, exp(softplus) for
        # the theta half.  exp(softplus(x)) == 1 + exp(x) for x <= 20 and
        # exp(x) above, so a single exp over the fused width suffices.
        big = y > 20.0
        e = jnp.exp(y)
        sp = jnp.where(big, y, jnp.log1p(e))     # softplus
        esp = jnp.where(big, e, 1.0 + e)         # exp(softplus)
        col = jax.lax.broadcasted_iota(jnp.int32, y.shape, 1)
        out = jnp.where(col >= n_genes, esp, sp)
        out_ref[...] = out.astype(out_ref.dtype)

    return kernel


# ------------------------------ host wrapper ----------------------------------


def fused_mlp_forward(x, fused_params, *, hidden_dims, n_genes, block_b=None):
    """Run one fused (mean-net + theta-net) MLP inside a single Pallas kernel,
    tiled over the batch dimension.  Returns (B, n_out_padded) f32."""
    B, n_in = x.shape
    n_out = fused_params[-1]["W"].shape[1]          # already padded to 128 lanes

    # Big batch tiles (MXU utilization, amortized per-step overhead); pad the
    # batch instead of asserting divisibility.
    if block_b is None:
        block_b = min(512, _round_up(B, 8))
    block_b = max(8, _round_up(int(block_b), 8))
    Bp = _round_up(B, block_b)
    if Bp != B:
        x = jnp.pad(x, ((0, Bp - B), (0, 0)))

    kernel = _make_fused_kernel(tuple(hidden_dims), int(n_genes))

    in_specs = [pl.BlockSpec((block_b, n_in), lambda i: (i, 0))]
    args = [x]
    flops = 0
    bytes_accessed = Bp * n_in * 4
    n_hidden = len(fused_params) - 1
    for li, p in enumerate(fused_params):
        W = p["W"]
        flops += 2 * Bp * W.shape[0] * W.shape[1]
        bytes_accessed += int(W.size) * W.dtype.itemsize
        in_specs.append(pl.BlockSpec(W.shape, lambda i: (0, 0)))
        args.append(W)
        b = p["b"].reshape(1, -1)
        bytes_accessed += int(b.size) * 4
        in_specs.append(pl.BlockSpec(b.shape, lambda i: (0, 0)))
        args.append(b)
        if li < n_hidden:
            g = p["gamma"].reshape(1, -1)
            be = p["beta"].reshape(1, -1)
            bytes_accessed += int(g.size) * 8
            in_specs.append(pl.BlockSpec(g.shape, lambda i: (0, 0)))
            args.append(g)
            in_specs.append(pl.BlockSpec(be.shape, lambda i: (0, 0)))
            args.append(be)
    bytes_accessed += Bp * n_out * 4

    out = pl.pallas_call(
        kernel,
        out_shape=jax.ShapeDtypeStruct((Bp, n_out), jnp.float32),
        grid=(Bp // block_b,),
        in_specs=in_specs,
        out_specs=pl.BlockSpec((block_b, n_out), lambda i: (i, 0)),
        compiler_params=pltpu.CompilerParams(
            dimension_semantics=("parallel",)),
        cost_estimate=pl.CostEstimate(
            flops=int(flops),
            transcendentals=int(2 * Bp * n_out),
            bytes_accessed=int(bytes_accessed)),
    )(*args)
    return out[:B]


# --------------------------- parameter setup ----------------------------------


def init_mlp_params(key, dims):
    """Deterministic init mimicking PyTorch Linear defaults:
    W, b ~ U(-1/sqrt(fan_in), 1/sqrt(fan_in)); LayerNorm gamma=1, beta=0."""
    params = []
    n_layers = len(dims) - 1
    for i in range(n_layers):
        fan_in, fan_out = dims[i], dims[i + 1]
        key, kw, kb = jax.random.split(key, 3)
        bound = 1.0 / jnp.sqrt(float(fan_in))
        p = {
            "W": jax.random.uniform(kw, (fan_in, fan_out), jnp.float32, -bound, bound),
            "b": jax.random.uniform(kb, (fan_out,), jnp.float32, -bound, bound),
        }
        if i < n_layers - 1:
            p["gamma"] = jnp.ones((fan_out,), jnp.float32)
            p["beta"] = jnp.zeros((fan_out,), jnp.float32)
        params.append(p)
    return params


def fuse_two_nets(params_a, params_b):
    """Fuse two same-architecture MLPs (mean-net, theta-net) into one stack:
    layer 0 concatenates weights along the output axis (shared input); deeper
    layers are block-diagonal.  Weights cast to bf16 (MXU operands); the fused
    output width is zero-padded to a multiple of 128 for lane-dense stores."""
    fused = []
    for i, (pa, pb) in enumerate(zip(params_a, params_b)):
        Wa, Wb = pa["W"], pb["W"]
        if i == 0:
            W = jnp.concatenate([Wa, Wb], axis=1)
        else:
            Ka, Na = Wa.shape
            Kb, Nb = Wb.shape
            W = jnp.zeros((Ka + Kb, Na + Nb), jnp.float32)
            W = W.at[:Ka, :Na].set(Wa).at[Ka:, Na:].set(Wb)
        p = {"W": W.astype(jnp.bfloat16),
             "b": jnp.concatenate([pa["b"], pb["b"]]).astype(jnp.float32)}
        if "gamma" in pa:
            p["gamma"] = jnp.concatenate([pa["gamma"], pb["gamma"]]).astype(jnp.float32)
            p["beta"] = jnp.concatenate([pa["beta"], pb["beta"]]).astype(jnp.float32)
        fused.append(p)

    W, b = fused[-1]["W"], fused[-1]["b"]
    n_out = W.shape[1]
    n_pad = _round_up(n_out, 128) - n_out
    if n_pad:
        W = jnp.pad(W, ((0, 0), (0, n_pad)))
        b = jnp.pad(b, (0, n_pad))
        fused[-1] = {"W": W, "b": b}
    return fused


def mlp_reference(x, params, *, apply_exp=False, bf16_dots=True):
    """Pure-JAX reference.  bf16_dots=True matches the kernel's MXU precision
    (bf16 operands, f32 accumulation); bf16_dots=False is the exact f32 module."""
    h = x.astype(jnp.float32)
    n_hidden = len(params) - 1
    for i, p in enumerate(params):
        W = p["W"]
        lhs = h
        if bf16_dots:
            lhs = h.astype(jnp.bfloat16)
            W = W.astype(jnp.bfloat16)
        h = jnp.dot(lhs, W, preferred_element_type=jnp.float32) + p["b"]
        if i < n_hidden:
            mu = jnp.mean(h, axis=-1, keepdims=True)
            var = jnp.mean((h - mu) ** 2, axis=-1, keepdims=True)
            h = (h - mu) * jax.lax.rsqrt(var + 1e-5)
            h = jnp.maximum(h * p["gamma"] + p["beta"], 0.0)
        else:
            h = jnp.where(h > 20.0, h, jnp.log1p(jnp.exp(jnp.minimum(h, 20.0))))
            if apply_exp:
                h = jnp.exp(h)
    return h


# --------------------------------- Decoder ------------------------------------


class DecoderPallas:
    def __init__(self, n_genes, n_latent, hidden_dims, num_clusters, seed=0):
        key = jax.random.PRNGKey(seed)
        k1, k2, k3, k4 = jax.random.split(key, 4)
        dims_z = [n_latent] + list(hidden_dims) + [n_genes]
        dims_c = [num_clusters] + list(hidden_dims) + [n_genes]
        self.n_genes = n_genes
        self.hidden_dims = list(hidden_dims)
        # raw f32 per-net params (kept for reference checking)
        self.decoder_net = init_mlp_params(k1, dims_z)
        self.theta_net = init_mlp_params(k2, dims_z)
        self.cluster_decoder_net = init_mlp_params(k3, dims_c)
        self.cluster_theta_net = init_mlp_params(k4, dims_c)
        # fused (mean|theta) stacks -> one Pallas kernel per input tensor
        self.z_fused = fuse_two_nets(self.decoder_net, self.theta_net)
        self.c_fused = fuse_two_nets(self.cluster_decoder_net, self.cluster_theta_net)

    def __call__(self, z, memberships, block_b=None):
        G = self.n_genes
        zo = fused_mlp_forward(z, self.z_fused, hidden_dims=self.hidden_dims,
                               n_genes=G, block_b=block_b)
        co = fused_mlp_forward(memberships, self.c_fused, hidden_dims=self.hidden_dims,
                               n_genes=G, block_b=block_b)
        return {
            "mean": zo[:, :G],
            "theta": zo[:, G:2 * G],
            "cluster_mean": co[:, :G],
            "cluster_theta": co[:, G:2 * G],
        }


# ----------------------------------- main -------------------------------------

if __name__ == "__main__":
    # small, module-consistent shapes
    n_genes = 64
    n_latent = 16
    hidden_dims = [32, 32]
    num_clusters = 8
    batch = 20          # deliberately not a multiple of 8: exercises batch padding

    key = jax.random.PRNGKey(0)
    kz, km = jax.random.split(key)
    z = jax.random.normal(kz, (batch, n_latent), jnp.float32)
    memberships = jax.nn.softmax(
        jax.random.normal(km, (batch, num_clusters), jnp.float32), axis=-1)

    dec = DecoderPallas(n_genes, n_latent, hidden_dims, num_clusters, seed=0)
    out = dec(z, memberships)
    out = jax.tree_util.tree_map(jax.block_until_ready, out)

    def reference_outputs(zz, mm, bf16_dots=True):
        return {
            "mean": mlp_reference(zz, dec.decoder_net, bf16_dots=bf16_dots),
            "theta": mlp_reference(zz, dec.theta_net, apply_exp=True, bf16_dots=bf16_dots),
            "cluster_mean": mlp_reference(mm, dec.cluster_decoder_net, bf16_dots=bf16_dots),
            "cluster_theta": mlp_reference(mm, dec.cluster_theta_net, apply_exp=True,
                                           bf16_dots=bf16_dots),
        }

    ref = reference_outputs(z, memberships, bf16_dots=True)       # precision-matched
    ref_f32 = reference_outputs(z, memberships, bf16_dots=False)  # exact-f32, loose check
    for name in ("mean", "theta", "cluster_mean", "cluster_theta"):
        assert out[name].shape == (batch, n_genes), name
        assert jnp.allclose(out[name], ref[name], rtol=5e-3, atol=5e-3), name
        assert jnp.allclose(out[name], ref_f32[name], rtol=1e-1, atol=1e-1), name

    # Larger batch: exercises a multi-step "parallel" grid (512-row tiles, 2 steps).
    big = 1024
    kb1, kb2 = jax.random.split(jax.random.PRNGKey(1))
    zb = jax.random.normal(kb1, (big, n_latent), jnp.float32)
    mb = jax.nn.softmax(jax.random.normal(kb2, (big, num_clusters), jnp.float32), axis=-1)
    outb = dec(zb, mb)
    outb = jax.tree_util.tree_map(jax.block_until_ready, outb)
    refb = reference_outputs(zb, mb, bf16_dots=True)
    for name in ("mean", "theta", "cluster_mean", "cluster_theta"):
        assert outb[name].shape == (big, n_genes), name
        assert jnp.allclose(outb[name], refb[name], rtol=5e-3, atol=5e-3), name

    print("KERNEL_OK")
</pallas_src>

<mosaic_0001>
module attributes {stable_mosaic.version = 11 : i64} {
  func.func @kernel(%arg0: i32, %arg1: memref<24x16xf32, #tpu.memory_space<vmem>>, %arg2: memref<16x64xbf16, #tpu.memory_space<vmem>>, %arg3: memref<1x64xf32, #tpu.memory_space<vmem>>, %arg4: memref<1x64xf32, #tpu.memory_space<vmem>>, %arg5: memref<1x64xf32, #tpu.memory_space<vmem>>, %arg6: memref<64x64xbf16, #tpu.memory_space<vmem>>, %arg7: memref<1x64xf32, #tpu.memory_space<vmem>>, %arg8: memref<1x64xf32, #tpu.memory_space<vmem>>, %arg9: memref<1x64xf32, #tpu.memory_space<vmem>>, %arg10: memref<64x128xbf16, #tpu.memory_space<vmem>>, %arg11: memref<1x128xf32, #tpu.memory_space<vmem>>, %arg12: memref<24x128xf32, #tpu.memory_space<vmem>>) attributes {dimension_semantics = [#tpu.dimension_semantics<parallel>], iteration_bounds = array<i64: 1>, scalar_prefetch = 0 : i64, scratch_operands = 0 : i64, tpu.core_type = #tpu.core_type<tc>, window_params = [{transform_indices = @transform_0, window_bounds = array<i64: 24, 16>}, {pipeline_mode = #tpu.pipeline_mode<synchronous>, transform_indices = @transform_1, window_bounds = array<i64: 16, 64>}, {pipeline_mode = #tpu.pipeline_mode<synchronous>, transform_indices = @transform_2, window_bounds = array<i64: 1, 64>}, {pipeline_mode = #tpu.pipeline_mode<synchronous>, transform_indices = @transform_3, window_bounds = array<i64: 1, 64>}, {pipeline_mode = #tpu.pipeline_mode<synchronous>, transform_indices = @transform_4, window_bounds = array<i64: 1, 64>}, {pipeline_mode = #tpu.pipeline_mode<synchronous>, transform_indices = @transform_5, window_bounds = array<i64: 64, 64>}, {pipeline_mode = #tpu.pipeline_mode<synchronous>, transform_indices = @transform_6, window_bounds = array<i64: 1, 64>}, {pipeline_mode = #tpu.pipeline_mode<synchronous>, transform_indices = @transform_7, window_bounds = array<i64: 1, 64>}, {pipeline_mode = #tpu.pipeline_mode<synchronous>, transform_indices = @transform_8, window_bounds = array<i64: 1, 64>}, {pipeline_mode = #tpu.pipeline_mode<synchronous>, transform_indices = @transform_9, window_bounds = array<i64: 64, 128>}, {pipeline_mode = #tpu.pipeline_mode<synchronous>, transform_indices = @transform_10, window_bounds = array<i64: 1, 128>}, {transform_indices = @transform_11, window_bounds = array<i64: 24, 128>}]} {
    %c0 = arith.constant 0 : index
    %c0_0 = arith.constant 0 : index
    %0 = vector.load %arg1[%c0, %c0_0] : memref<24x16xf32, #tpu.memory_space<vmem>>, vector<24x16xf32>
    %c0_1 = arith.constant 0 : index
    %c0_2 = arith.constant 0 : index
    %1 = vector.load %arg2[%c0_1, %c0_2] : memref<16x64xbf16, #tpu.memory_space<vmem>>, vector<16x64xbf16>
    %c0_3 = arith.constant 0 : index
    %c0_4 = arith.constant 0 : index
    %2 = vector.load %arg3[%c0_3, %c0_4] : memref<1x64xf32, #tpu.memory_space<vmem>>, vector<1x64xf32>
    %c0_5 = arith.constant 0 : index
    %c0_6 = arith.constant 0 : index
    %3 = vector.load %arg4[%c0_5, %c0_6] : memref<1x64xf32, #tpu.memory_space<vmem>>, vector<1x64xf32>
    %c0_7 = arith.constant 0 : index
    %c0_8 = arith.constant 0 : index
    %4 = vector.load %arg5[%c0_7, %c0_8] : memref<1x64xf32, #tpu.memory_space<vmem>>, vector<1x64xf32>
    %5 = arith.truncf %0 : vector<24x16xf32> to vector<24x16xbf16>
    %cst = arith.constant dense<0.000000e+00> : vector<24x64xf32>
    %6 = tpu.matmul %5, %1, %cst {dimension_numbers = #tpu.dot_dimension_numbers<[1], [0], [0], [1], [0, 0, 1, 1], [], []>} : vector<24x16xbf16>, vector<16x64xbf16>, vector<24x64xf32> -> vector<24x64xf32>
    %7 = vector.broadcast %2 : vector<1x64xf32> to vector<24x64xf32>
    %8 = arith.addf %6, %7 : vector<24x64xf32>
    %9 = tpu.iota {dimensions = array<i32: 1>} : vector<24x64xi32>
    %c32_i32 = arith.constant 32 : i32
    %10 = vector.broadcast %c32_i32 : i32 to vector<24x64xi32>
    %11 = arith.cmpi sge, %9, %10 : vector<24x64xi32>
    %cst_9 = arith.constant 0.000000e+00 : f32
    %12 = vector.broadcast %cst_9 : f32 to vector<24x64xf32>
    %13 = arith.select %11, %12, %8 : vector<24x64xi1>, vector<24x64xf32>
    %cst_10 = arith.constant dense<0.000000e+00> : vector<24xf32>
    %14 = vector.multi_reduction <add>, %13, %cst_10 [1] : vector<24x64xf32> to vector<24xf32>
    %15 = vector.shape_cast %14 : vector<24xf32> to vector<24x1xf32>
    %cst_11 = arith.constant 3.125000e-02 : f32
    %16 = vector.broadcast %cst_11 : f32 to vector<24x1xf32>
    %17 = arith.mulf %15, %16 : vector<24x1xf32>
    %cst_12 = arith.constant 0.000000e+00 : f32
    %18 = vector.broadcast %cst_12 : f32 to vector<24x64xf32>
    %19 = arith.select %11, %8, %18 : vector<24x64xi1>, vector<24x64xf32>
    %cst_13 = arith.constant dense<0.000000e+00> : vector<24xf32>
    %20 = vector.multi_reduction <add>, %19, %cst_13 [1] : vector<24x64xf32> to vector<24xf32>
    %21 = vector.shape_cast %20 : vector<24xf32> to vector<24x1xf32>
    %cst_14 = arith.constant 3.125000e-02 : f32
    %22 = vector.broadcast %cst_14 : f32 to vector<24x1xf32>
    %23 = arith.mulf %21, %22 : vector<24x1xf32>
    %24 = vector.shape_cast %23 : vector<24x1xf32> to vector<24x1xf32>
    %25 = vector.broadcast %24 : vector<24x1xf32> to vector<24x64xf32>
    %26 = vector.shape_cast %17 : vector<24x1xf32> to vector<24x1xf32>
    %27 = vector.broadcast %26 : vector<24x1xf32> to vector<24x64xf32>
    %28 = arith.select %11, %25, %27 : vector<24x64xi1>, vector<24x64xf32>
    %29 = arith.subf %8, %28 : vector<24x64xf32>
    %30 = arith.mulf %29, %29 : vector<24x64xf32>
    %cst_15 = arith.constant 0.000000e+00 : f32
    %31 = vector.broadcast %cst_15 : f32 to vector<24x64xf32>
    %32 = arith.select %11, %31, %30 : vector<24x64xi1>, vector<24x64xf32>
    %cst_16 = arith.constant dense<0.000000e+00> : vector<24xf32>
    %33 = vector.multi_reduction <add>, %32, %cst_16 [1] : vector<24x64xf32> to vector<24xf32>
    %34 = vector.shape_cast %33 : vector<24xf32> to vector<24x1xf32>
    %cst_17 = arith.constant 3.125000e-02 : f32
    %35 = vector.broadcast %cst_17 : f32 to vector<24x1xf32>
    %36 = arith.mulf %34, %35 : vector<24x1xf32>
    %37 = arith.mulf %29, %29 : vector<24x64xf32>
    %cst_18 = arith.constant 0.000000e+00 : f32
    %38 = vector.broadcast %cst_18 : f32 to vector<24x64xf32>
    %39 = arith.select %11, %37, %38 : vector<24x64xi1>, vector<24x64xf32>
    %cst_19 = arith.constant dense<0.000000e+00> : vector<24xf32>
    %40 = vector.multi_reduction <add>, %39, %cst_19 [1] : vector<24x64xf32> to vector<24xf32>
    %41 = vector.shape_cast %40 : vector<24xf32> to vector<24x1xf32>
    %cst_20 = arith.constant 3.125000e-02 : f32
    %42 = vector.broadcast %cst_20 : f32 to vector<24x1xf32>
    %43 = arith.mulf %41, %42 : vector<24x1xf32>
    %44 = vector.shape_cast %43 : vector<24x1xf32> to vector<24x1xf32>
    %45 = vector.broadcast %44 : vector<24x1xf32> to vector<24x64xf32>
    %46 = vector.shape_cast %36 : vector<24x1xf32> to vector<24x1xf32>
    %47 = vector.broadcast %46 : vector<24x1xf32> to vector<24x64xf32>
    %48 = arith.select %11, %45, %47 : vector<24x64xi1>, vector<24x64xf32>
    %cst_21 = arith.constant 9.99999974E-6 : f32
    %49 = vector.broadcast %cst_21 : f32 to vector<24x64xf32>
    %50 = arith.addf %48, %49 : vector<24x64xf32>
    %51 = math.rsqrt %50 : vector<24x64xf32>
    %52 = arith.mulf %29, %51 : vector<24x64xf32>
    %53 = vector.broadcast %3 : vector<1x64xf32> to vector<24x64xf32>
    %54 = arith.mulf %52, %53 : vector<24x64xf32>
    %55 = vector.broadcast %4 : vector<1x64xf32> to vector<24x64xf32>
    %56 = arith.addf %54, %55 : vector<24x64xf32>
    %cst_22 = arith.constant 0.000000e+00 : f32
    %57 = vector.broadcast %cst_22 : f32 to vector<24x64xf32>
    %58 = arith.maximumf %56, %57 : vector<24x64xf32>
    %c0_23 = arith.constant 0 : index
    %c0_24 = arith.constant 0 : index
    %59 = vector.load %arg6[%c0_23, %c0_24] : memref<64x64xbf16, #tpu.memory_space<vmem>>, vector<64x64xbf16>
    %c0_25 = arith.constant 0 : index
    %c0_26 = arith.constant 0 : index
    %60 = vector.load %arg7[%c0_25, %c0_26] : memref<1x64xf32, #tpu.memory_space<vmem>>, vector<1x64xf32>
    %c0_27 = arith.constant 0 : index
    %c0_28 = arith.constant 0 : index
    %61 = vector.load %arg8[%c0_27, %c0_28] : memref<1x64xf32, #tpu.memory_space<vmem>>, vector<1x64xf32>
    %c0_29 = arith.constant 0 : index
    %c0_30 = arith.constant 0 : index
    %62 = vector.load %arg9[%c0_29, %c0_30] : memref<1x64xf32, #tpu.memory_space<vmem>>, vector<1x64xf32>
    %63 = arith.truncf %58 : vector<24x64xf32> to vector<24x64xbf16>
    %cst_31 = arith.constant dense<0.000000e+00> : vector<24x64xf32>
    %64 = tpu.matmul %63, %59, %cst_31 {dimension_numbers = #tpu.dot_dimension_numbers<[1], [0], [0], [1], [0, 0, 1, 1], [], []>} : vector<24x64xbf16>, vector<64x64xbf16>, vector<24x64xf32> -> vector<24x64xf32>
    %65 = vector.broadcast %60 : vector<1x64xf32> to vector<24x64xf32>
    %66 = arith.addf %64, %65 : vector<24x64xf32>
    %67 = tpu.iota {dimensions = array<i32: 1>} : vector<24x64xi32>
    %c32_i32_32 = arith.constant 32 : i32
    %68 = vector.broadcast %c32_i32_32 : i32 to vector<24x64xi32>
    %69 = arith.cmpi sge, %67, %68 : vector<24x64xi32>
    %cst_33 = arith.constant 0.000000e+00 : f32
    %70 = vector.broadcast %cst_33 : f32 to vector<24x64xf32>
    %71 = arith.select %69, %70, %66 : vector<24x64xi1>, vector<24x64xf32>
    %cst_34 = arith.constant dense<0.000000e+00> : vector<24xf32>
    %72 = vector.multi_reduction <add>, %71, %cst_34 [1] : vector<24x64xf32> to vector<24xf32>
    %73 = vector.shape_cast %72 : vector<24xf32> to vector<24x1xf32>
    %cst_35 = arith.constant 3.125000e-02 : f32
    %74 = vector.broadcast %cst_35 : f32 to vector<24x1xf32>
    %75 = arith.mulf %73, %74 : vector<24x1xf32>
    %cst_36 = arith.constant 0.000000e+00 : f32
    %76 = vector.broadcast %cst_36 : f32 to vector<24x64xf32>
    %77 = arith.select %69, %66, %76 : vector<24x64xi1>, vector<24x64xf32>
    %cst_37 = arith.constant dense<0.000000e+00> : vector<24xf32>
    %78 = vector.multi_reduction <add>, %77, %cst_37 [1] : vector<24x64xf32> to vector<24xf32>
    %79 = vector.shape_cast %78 : vector<24xf32> to vector<24x1xf32>
    %cst_38 = arith.constant 3.125000e-02 : f32
    %80 = vector.broadcast %cst_38 : f32 to vector<24x1xf32>
    %81 = arith.mulf %79, %80 : vector<24x1xf32>
    %82 = vector.shape_cast %81 : vector<24x1xf32> to vector<24x1xf32>
    %83 = vector.broadcast %82 : vector<24x1xf32> to vector<24x64xf32>
    %84 = vector.shape_cast %75 : vector<24x1xf32> to vector<24x1xf32>
    %85 = vector.broadcast %84 : vector<24x1xf32> to vector<24x64xf32>
    %86 = arith.select %69, %83, %85 : vector<24x64xi1>, vector<24x64xf32>
    %87 = arith.subf %66, %86 : vector<24x64xf32>
    %88 = arith.mulf %87, %87 : vector<24x64xf32>
    %cst_39 = arith.constant 0.000000e+00 : f32
    %89 = vector.broadcast %cst_39 : f32 to vector<24x64xf32>
    %90 = arith.select %69, %89, %88 : vector<24x64xi1>, vector<24x64xf32>
    %cst_40 = arith.constant dense<0.000000e+00> : vector<24xf32>
    %91 = vector.multi_reduction <add>, %90, %cst_40 [1] : vector<24x64xf32> to vector<24xf32>
    %92 = vector.shape_cast %91 : vector<24xf32> to vector<24x1xf32>
    %cst_41 = arith.constant 3.125000e-02 : f32
    %93 = vector.broadcast %cst_41 : f32 to vector<24x1xf32>
    %94 = arith.mulf %92, %93 : vector<24x1xf32>
    %95 = arith.mulf %87, %87 : vector<24x64xf32>
    %cst_42 = arith.constant 0.000000e+00 : f32
    %96 = vector.broadcast %cst_42 : f32 to vector<24x64xf32>
    %97 = arith.select %69, %95, %96 : vector<24x64xi1>, vector<24x64xf32>
    %cst_43 = arith.constant dense<0.000000e+00> : vector<24xf32>
    %98 = vector.multi_reduction <add>, %97, %cst_43 [1] : vector<24x64xf32> to vector<24xf32>
    %99 = vector.shape_cast %98 : vector<24xf32> to vector<24x1xf32>
    %cst_44 = arith.constant 3.125000e-02 : f32
    %100 = vector.broadcast %cst_44 : f32 to vector<24x1xf32>
    %101 = arith.mulf %99, %100 : vector<24x1xf32>
    %102 = vector.shape_cast %101 : vector<24x1xf32> to vector<24x1xf32>
    %103 = vector.broadcast %102 : vector<24x1xf32> to vector<24x64xf32>
    %104 = vector.shape_cast %94 : vector<24x1xf32> to vector<24x1xf32>
    %105 = vector.broadcast %104 : vector<24x1xf32> to vector<24x64xf32>
    %106 = arith.select %69, %103, %105 : vector<24x64xi1>, vector<24x64xf32>
    %cst_45 = arith.constant 9.99999974E-6 : f32
    %107 = vector.broadcast %cst_45 : f32 to vector<24x64xf32>
    %108 = arith.addf %106, %107 : vector<24x64xf32>
    %109 = math.rsqrt %108 : vector<24x64xf32>
    %110 = arith.mulf %87, %109 : vector<24x64xf32>
    %111 = vector.broadcast %61 : vector<1x64xf32> to vector<24x64xf32>
    %112 = arith.mulf %110, %111 : vector<24x64xf32>
    %113 = vector.broadcast %62 : vector<1x64xf32> to vector<24x64xf32>
    %114 = arith.addf %112, %113 : vector<24x64xf32>
    %cst_46 = arith.constant 0.000000e+00 : f32
    %115 = vector.broadcast %cst_46 : f32 to vector<24x64xf32>
    %116 = arith.maximumf %114, %115 : vector<24x64xf32>
    %c0_47 = arith.constant 0 : index
    %c0_48 = arith.constant 0 : index
    %117 = vector.load %arg10[%c0_47, %c0_48] : memref<64x128xbf16, #tpu.memory_space<vmem>>, vector<64x128xbf16>
    %c0_49 = arith.constant 0 : index
    %c0_50 = arith.constant 0 : index
    %118 = vector.load %arg11[%c0_49, %c0_50] : memref<1x128xf32, #tpu.memory_space<vmem>>, vector<1x128xf32>
    %119 = arith.truncf %116 : vector<24x64xf32> to vector<24x64xbf16>
    %cst_51 = arith.constant dense<0.000000e+00> : vector<24x128xf32>
    %120 = tpu.matmul %119, %117, %cst_51 {dimension_numbers = #tpu.dot_dimension_numbers<[1], [0], [0], [1], [0, 0, 1, 1], [], []>} : vector<24x64xbf16>, vector<64x128xbf16>, vector<24x128xf32> -> vector<24x128xf32>
    %121 = vector.broadcast %118 : vector<1x128xf32> to vector<24x128xf32>
    %122 = arith.addf %120, %121 : vector<24x128xf32>
    %cst_52 = arith.constant 2.000000e+01 : f32
    %123 = vector.broadcast %cst_52 : f32 to vector<24x128xf32>
    %124 = arith.cmpf ogt, %122, %123 : vector<24x128xf32>
    %125 = math.exp %122 : vector<24x128xf32>
    %126 = math.log1p %125 : vector<24x128xf32>
    %127 = arith.select %124, %122, %126 : vector<24x128xi1>, vector<24x128xf32>
    %cst_53 = arith.constant 1.000000e+00 : f32
    %128 = vector.broadcast %cst_53 : f32 to vector<24x128xf32>
    %129 = arith.addf %128, %125 : vector<24x128xf32>
    %130 = arith.select %124, %125, %129 : vector<24x128xi1>, vector<24x128xf32>
    %131 = tpu.iota {dimensions = array<i32: 1>} : vector<24x128xi32>
    %c64_i32 = arith.constant 64 : i32
    %132 = vector.broadcast %c64_i32 : i32 to vector<24x128xi32>
    %133 = arith.cmpi sge, %131, %132 : vector<24x128xi32>
    %134 = arith.select %133, %130, %127 : vector<24x128xi1>, vector<24x128xf32>
    %c0_54 = arith.constant 0 : index
    %c0_55 = arith.constant 0 : index
    %135 = vector.load %arg12[%c0_54, %c0_55] : memref<24x128xf32, #tpu.memory_space<vmem>>, vector<24x128xf32>
    tpu.vector_store %arg12[%c0_54, %c0_55], %134 {strides = array<i32>} : memref<24x128xf32, #tpu.memory_space<vmem>>, vector<24x128xf32>,
    return
  }
  func.func @transform_0(%arg0: i32) -> (i32, i32) {
    %c0_i32 = arith.constant 0 : i32
    %c0_i32_0 = arith.constant 0 : i32
    return %arg0, %c0_i32 : i32, i32
  }
  func.func @transform_1(%arg0: i32) -> (i32, i32) {
    %c0_i32 = arith.constant 0 : i32
    %c0_i32_0 = arith.constant 0 : i32
    %c0_i32_1 = arith.constant 0 : i32
    return %c0_i32, %c0_i32_0 : i32, i32
  }
  func.func @transform_2(%arg0: i32) -> (i32, i32) {
    %c0_i32 = arith.constant 0 : i32
    %c0_i32_0 = arith.constant 0 : i32
    %c0_i32_1 = arith.constant 0 : i32
    return %c0_i32, %c0_i32_0 : i32, i32
  }
  func.func @transform_3(%arg0: i32) -> (i32, i32) {
    %c0_i32 = arith.constant 0 : i32
    %c0_i32_0 = arith.constant 0 : i32
    %c0_i32_1 = arith.constant 0 : i32
    return %c0_i32, %c0_i32_0 : i32, i32
  }
  func.func @transform_4(%arg0: i32) -> (i32, i32) {
    %c0_i32 = arith.constant 0 : i32
    %c0_i32_0 = arith.constant 0 : i32
    %c0_i32_1 = arith.constant 0 : i32
    return %c0_i32, %c0_i32_0 : i32, i32
  }
  func.func @transform_5(%arg0: i32) -> (i32, i32) {
    %c0_i32 = arith.constant 0 : i32
    %c0_i32_0 = arith.constant 0 : i32
    %c0_i32_1 = arith.constant 0 : i32
    return %c0_i32, %c0_i32_0 : i32, i32
  }
  func.func @transform_6(%arg0: i32) -> (i32, i32) {
    %c0_i32 = arith.constant 0 : i32
    %c0_i32_0 = arith.constant 0 : i32
    %c0_i32_1 = arith.constant 0 : i32
    return %c0_i32, %c0_i32_0 : i32, i32
  }
  func.func @transform_7(%arg0: i32) -> (i32, i32) {
    %c0_i32 = arith.constant 0 : i32
    %c0_i32_0 = arith.constant 0 : i32
    %c0_i32_1 = arith.constant 0 : i32
    return %c0_i32, %c0_i32_0 : i32, i32
  }
  func.func @transform_8(%arg0: i32) -> (i32, i32) {
    %c0_i32 = arith.constant 0 : i32
    %c0_i32_0 = arith.constant 0 : i32
    %c0_i32_1 = arith.constant 0 : i32
    return %c0_i32, %c0_i32_0 : i32, i32
  }
  func.func @transform_9(%arg0: i32) -> (i32, i32) {
    %c0_i32 = arith.constant 0 : i32
    %c0_i32_0 = arith.constant 0 : i32
    %c0_i32_1 = arith.constant 0 : i32
    return %c0_i32, %c0_i32_0 : i32, i32
  }
  func.func @transform_10(%arg0: i32) -> (i32, i32) {
    %c0_i32 = arith.constant 0 : i32
    %c0_i32_0 = arith.constant 0 : i32
    %c0_i32_1 = arith.constant 0 : i32
    return %c0_i32, %c0_i32_0 : i32, i32
  }
  func.func @transform_11(%arg0: i32) -> (i32, i32) {
    %c0_i32 = arith.constant 0 : i32
    %c0_i32_0 = arith.constant 0 : i32
    return %arg0, %c0_i32 : i32, i32
  }
}

</mosaic_0001>

<bundles_post_ra>
// kernel: tpu_custom_call.1
= control target key start
LH: loop header
LB: loop body
LE: loop exit
PB: predicated region body
PF: predicated region fallthrough
CT: control target
= control target key end

     0   :  { %16 = vsyncpa [#allocation3], 0  ;;  %s1175_s0 = inlined_call_operand.vmem [shape: f32[24,16], index: 0, kind: input, shape index: {}]   ;;  %s1176_s1 = inlined_call_operand.hbm [shape: bf16[16,64], index: 1, kind: input, shape index: {}]   ;;  %s1177_s2 = inlined_call_operand.vmem [shape: f32[1,64], index: 2, kind: input, shape index: {}]   ;;  %s1178_s3 = inlined_call_operand.vmem [shape: f32[1,64], index: 3, kind: input, shape index: {}]   ;;  %s1179_s4 = inlined_call_operand.hbm [shape: f32[1,64], index: 4, kind: input, shape index: {}]   ;;  %s1180_s5 = inlined_call_operand.vmem [shape: bf16[64,64], index: 5, kind: input, shape index: {}]   ;;  %s1181_s6 = inlined_call_operand.hbm [shape: f32[1,64], index: 6, kind: input, shape index: {}]   ;;  %s1182_s7 = inlined_call_operand.hbm [shape: f32[1,64], index: 7, kind: input, shape index: {}]   ;;  %s1183_s8 = inlined_call_operand.vmem [shape: f32[1,64], index: 8, kind: input, shape index: {}]   ;;  %s1184_s9 = inlined_call_operand.vmem [shape: bf16[64,128], index: 9, kind: input, shape index: {}]   ;;  %s1185_s10 = inlined_call_operand.vmem [shape: f32[1,128], index: 10, kind: input, shape index: {}]   ;;  %s1186_s11 = inlined_call_operand.hbm [shape: f32[24,128], index: 11, kind: output, shape index: {}]  }
   0x1   :  { %17 = vsyncpa [#allocation6], 0 }
   0x2   :  { %18 = vsyncpa [#allocation9], 0 }
   0x3   :  { %19 = vsyncpa [#allocation4], 0  ;;  %s864_s17 = smov [#allocation5]   ;;  %s865_s19 = smov [#allocation2]  }
   0x4   :  { %s44_s18 = sshll.u32 %s864_s17, 4  ;;  %s27_s20 = sshll.u32 %s865_s19, 4  ;;  %s45_s18 = int_to_ptr.vmem [resolvable:$true] %s44_s18  ;;  %s933_s20 = int_to_ptr.vmem [resolvable:$true] %s27_s20 }
   0x5   :  { %s746_s23 = scalar_lea.hbm %s1179_s4, 16 }
   0x6   :  { %p747_p0 = scmp.ne.s32.totalorder %s1179_s4, %s746_s23  ;;  %p750_p1 = scmp.lt.u32.totalorder %s746_s23, %s1179_s4 }
   0x8   :  { %p752_p2 = pnand %p750_p1, %p747_p0 }
   0xa   :  { %755 = shalt.err (!%p752_p2)
}
   0xb   :  { %s756_s28 = scalar_lea.vmem %s45_s18, 16  ;;  %s760_s29 = scalar_lea.vmem %s45_s18, 32 }
   0xc   :  { %p757_p3 = scmp.ne.s32.totalorder %s45_s18, %s756_s28  ;;  %p761_p4 = scmp.lt.s32.totalorder %s45_s18, %s45_s18 }
   0xd   :  { %p762_p5 = scmp.lt.s32.totalorder %s760_s29, %s756_s28 }
   0xf   :  { %p763_p6 = por %p762_p5, %p761_p4 }
  0x11   :  { %p764_p7 = pnand %p763_p6, %p757_p3 }
  0x13   :  { %767 = shalt.err (!%p764_p7)
}
  0x14   :  { %47 = dma.hbm_to_vmem [thread:$0]  %s1179_s4, 16, %s45_s18, [#allocation6]  }
  0x15   :  { %s768_s15 = scalar_lea.hbm %s1176_s1, 128 }
  0x16   :  { %p769_p8 = scmp.ne.s32.totalorder %s1176_s1, %s768_s15  ;;  %p772_p9 = scmp.lt.u32.totalorder %s768_s15, %s1176_s1 }
  0x18   :  { %p774_p10 = pnand %p772_p9, %p769_p8 }
  0x1a   :  { %777 = shalt.err (!%p774_p10)
}
  0x1b   :  { %s778_s22 = scalar_lea.vmem %s933_s20, 128  ;;  %p783_p12 = scmp.lt.s32.totalorder %s933_s20, %s933_s20 }
  0x1c   :  { %p779_p11 = scmp.ne.s32.totalorder %s933_s20, %s778_s22  ;;  %p784_p13 = scmp.lt.s32.totalorder %s778_s22, %s778_s22 }
  0x1e   :  { %p785_p0 = por %p784_p13, %p783_p12 }
  0x20   :  { %p786_p1 = pnand %p785_p0, %p779_p11 }
  0x22   :  { %789 = shalt.err (!%p786_p1)
}
  0x23   :  { %s866_s4 = smov 64   ;;  %s867_s18 = smov 4  }
  0x24   :  { %33 = dma.hbm_to_vmem [thread:$0]  %s1176_s1, 128, %s933_s20, [#allocation3], %s866_s4, %s866_s4, %s867_s18  }
  0x25   :  { %s868_s25 = smov [#allocation7]   ;;  %s869_s27 = smov [#allocation8]  }
  0x26   :  { %s56_s26 = sshll.u32 %s868_s25, 4  ;;  %s66_s28 = sshll.u32 %s869_s27, 4  ;;  %s57_s26 = int_to_ptr.vmem [resolvable:$true] %s56_s26  ;;  %s67_s28 = int_to_ptr.vmem [resolvable:$true] %s66_s28 }
  0x27   :  { %s790_s12 = scalar_lea.hbm %s1181_s6, 16 }
  0x28   :  { %p791_p2 = scmp.ne.s32.totalorder %s1181_s6, %s790_s12  ;;  %p794_p3 = scmp.lt.u32.totalorder %s790_s12, %s1181_s6 }
  0x2a   :  { %p796_p4 = pnand %p794_p3, %p791_p2 }
  0x2c   :  { %799 = shalt.err (!%p796_p4)
}
  0x2d   :  { %s800_s1 = scalar_lea.vmem %s57_s26, 16  ;;  %s804_s20 = scalar_lea.vmem %s57_s26, 32 }
  0x2e   :  { %p801_p5 = scmp.ne.s32.totalorder %s57_s26, %s800_s1  ;;  %p805_p6 = scmp.lt.s32.totalorder %s57_s26, %s57_s26 }
  0x2f   :  { %p806_p7 = scmp.lt.s32.totalorder %s804_s20, %s800_s1 }
  0x31   :  { %p807_p8 = por %p806_p7, %p805_p6 }
  0x33   :  { %p808_p9 = pnand %p807_p8, %p801_p5 }
  0x35   :  { %811 = shalt.err (!%p808_p9)
}
  0x36   :  { %59 = dma.hbm_to_vmem [thread:$0]  %s1181_s6, 16, %s57_s26, [#allocation6]  }
  0x37   :  { %s812_s4 = scalar_lea.hbm %s1182_s7, 16 }
  0x38   :  { %p813_p10 = scmp.ne.s32.totalorder %s1182_s7, %s812_s4  ;;  %p816_p11 = scmp.lt.u32.totalorder %s812_s4, %s1182_s7 }
  0x3a   :  { %p818_p12 = pnand %p816_p11, %p813_p10 }
  0x3c   :  { %821 = shalt.err (!%p818_p12)
}
  0x3d   :  { %s822_s27 = scalar_lea.vmem %s67_s28, 16  ;;  %s826_s29 = scalar_lea.vmem %s67_s28, 32 }
  0x3e   :  { %p823_p13 = scmp.ne.s32.totalorder %s67_s28, %s822_s27  ;;  %p827_p0 = scmp.lt.s32.totalorder %s67_s28, %s67_s28 }
  0x3f   :  { %p828_p1 = scmp.lt.s32.totalorder %s826_s29, %s822_s27 }
  0x41   :  { %p829_p2 = por %p828_p1, %p827_p0 }
  0x43   :  { %p830_p3 = pnand %p829_p2, %p823_p13 }
  0x45   :  { %833 = shalt.err (!%p830_p3)
}
  0x46   :  { %69 = dma.hbm_to_vmem [thread:$0]  %s1182_s7, 16, %s67_s28, [#allocation9]  }
  0x47   :  { %856 = dma.done.wait [#allocation3], 128  }
  0x48   :  { %857 = vsyncadd [#allocation3], 4294967168 }
  0x49   :  { %858 = dma.done.wait [#allocation6], 32  }
  0x4a   :  { %859 = vsyncadd [#allocation6], 4294967264 }
  0x4b   :  { %860 = dma.done.wait [#allocation9], 16  }
  0x4c   :  { %861 = vsyncadd [#allocation9], 4294967280  ;;  %v713_v0 = vld [vmem:[#allocation2] sm:$0xff]   ;;  %v89_v1 = vld [vmem:[%s1175_s0] sm:$0xff]  ;;  %vm111_vm0 = vcmask 130048   ;;  %v166_v6 = vlaneseq  ;;  %vm172_vm2 = vcmask 523264  }
  0x4d   :  { %v90_v2 = vld [vmem:[%s1175_s0 + $0x8] sm:$0xff]  ;;  %v91_v3 = vld [vmem:[%s1175_s0 + $0x10] sm:$0xff]  ;;  %674 = vmatprep.subr.bf16.mxu0 %v713_v0  ;;  %v637_v8 = vld [vmem:[%s1177_s2] ss:$0 sm:$0xff] }
  0x4e   :  { %v97_v4 = vpack.c.bf16 %v90_v2, %v89_v1  ;;  %v98_v5 = vpack.c.bf16 %v91_v3, %v91_v3  ;;  %675 = vmatpush3.bf16.msra.mxu0 %v713_v0  ;;  %v997_v7 = vand.u32 127, %v166_v6  ;;  %v714_v61 = vld [vmem:[%s1180_s5] sm:$0xff]   ;;  %v715_v62 = vld [vmem:[%s1180_s5 + $0x8] sm:$0xff]   ;;  %v716_v63 = vld [vmem:[%s1180_s5 + $0x10] sm:$0xff]  }
  0x4f   :  { %680 = vmatprep.subr.bf16.mxu1 %v714_v61  ;;  %v717_v0 = vld [vmem:[%s1180_s5 + $0x18] sm:$0xff]  }
  0x50   :  { %676 = vmatprep.mubr.msk.bf16.mxu0 %vm111_vm0, %v97_v4  ;;  %vm168_vm1 = vcmp.ge.s32.totalorder %v997_v7, 32  ;;  %681 = vmatpush3.bf16.msra.mxu1 %v714_v61  ;;  %vm611_vm3 = vcmp.ge.s32.totalorder %v997_v7, 64 }
  0x51   :  { %677 = vmatmul.mubr.msk.bf16.vlgmr.msra.gmra.mrb[0].mxu0 %vm111_vm0, %v98_v5  ;;  %682 = vmatprep.subr.bf16.mxu1 %v715_v62 }
  0x54   :  { %683 = vmatpush3.bf16.msra.mxu1 %v715_v62 }
  0x55   :  { %684 = vmatprep.subr.bf16.mxu1 %v716_v63 }
  0x58   :  { %685 = vmatpush3.bf16.msra.mxu1 %v716_v63 }
  0x59   :  { %686 = vmatprep.subr.bf16.mxu1 %v717_v0 }
  0x5c   :  { %687 = vmatpush3.bf16.msra.mxu1 %v717_v0 }
 0x124   :  { %v678_v9 = vpop.f32.mrb[0].mxu0 }
 0x125   :  { %v152_v10 = vpop.f32.mrb[1].mxu0  ;;  %v161_v19 = vadd.f32 %v678_v9, %v637_v8 }
 0x126   :  { %v153_v11 = vadd.f32 %v637_v8, %v152_v10  ;;  %v679_v12 = vpop.f32.mrb[2].mxu0 }
 0x127   :  { %v155_v13 = vpop.f32.mrb[3].mxu0  ;;  %v187_v24 = vsel %vm168_vm1, %v161_v19, 0.0  ;;  %v171_v25 = vsel %vm168_vm1, 0.0, %v161_v19 }
 0x128   :  { %v156_v14 = vadd.f32 %v637_v8, %v155_v13  ;;  %v185_v15 = vsel %vm168_vm1, %v153_v11, 0.0  ;;  %v169_v16 = vsel %vm168_vm1, 0.0, %v153_v11  ;;  %v194_v26 = vsel %vm172_vm2, %v187_v24, 0.0 }
 0x129   :  { %v188_v17 = vsel %vm172_vm2, %v185_v15, 0.0  ;;  %v173_v18 = vsel %vm172_vm2, %v169_v16, 0.0  ;;  %v179_v27 = vsel %vm172_vm2, %v171_v25, 0.0  ;;  %v642_v25 = vld [vmem:[#allocation5] ss:$0 sm:$0xff] }
 0x12a   :  { %189 = vadd.xlane.f32.xlu1 %v188_v17  ;;  %174 = vadd.xlane.f32.xlu0 %v173_v18  ;;  %v186_v20 = vsel %vm168_vm1, %v156_v14, 0.0  ;;  %v170_v21 = vsel %vm168_vm1, 0.0, %v156_v14 }
 0x12b   :  { %v191_v22 = vsel %vm172_vm2, %v186_v20, 0.0  ;;  %v176_v23 = vsel %vm172_vm2, %v170_v21, 0.0  ;;  %v641_v21 = vld [vmem:[%s1178_s3] ss:$0 sm:$0xff] }
 0x12e   :  { %192 = vadd.xlane.f32.xlu1 %v191_v22  ;;  %177 = vadd.xlane.f32.xlu0 %v176_v23 }
 0x132   :  { %195 = vadd.xlane.f32.xlu1 %v194_v26  ;;  %180 = vadd.xlane.f32.xlu0 %v179_v27 }
 0x1b7   :  { %v190_v28 = vpop.xlane.xlu1 %189  ;;  %v175_v29 = vpop.xlane.xlu0 %174 }
 0x1b8   :  { %v197_v30 = vmul.f32 0.03125, %v190_v28  ;;  %v182_v31 = vmul.f32 0.03125, %v175_v29 }
 0x1ba   :  { %v200_v32 = vsel %vm168_vm1, %v197_v30, %v182_v31 }
 0x1bb   :  { %v193_v33 = vpop.xlane.xlu1 %192  ;;  %v178_v34 = vpop.xlane.xlu0 %177  ;;  %v1023_v35 = vsub.f32 %v153_v11, %v200_v32 }
 0x1bc   :  { %v198_v36 = vmul.f32 0.03125, %v193_v33  ;;  %v183_v37 = vmul.f32 0.03125, %v178_v34 }
 0x1bd   :  { %v206_v38 = vmul.f32 %v1023_v35, %v1023_v35 }
 0x1be   :  { %v201_v39 = vsel %vm168_vm1, %v198_v36, %v183_v37 }
 0x1bf   :  { %v196_v40 = vpop.xlane.xlu1 %195  ;;  %v181_v41 = vpop.xlane.xlu0 %180  ;;  %v209_v42 = vsel %vm168_vm1, 0.0, %v206_v38  ;;  %v1031_v43 = vsub.f32 %v156_v14, %v201_v39  ;;  %v224_v47 = vsel %vm168_vm1, %v206_v38, 0.0 }
 0x1c0   :  { %v199_v44 = vmul.f32 0.03125, %v196_v40  ;;  %v184_v45 = vmul.f32 0.03125, %v181_v41  ;;  %v212_v46 = vsel %vm172_vm2, %v209_v42, 0.0  ;;  %v227_v52 = vsel %vm172_vm2, %v224_v47, 0.0 }
 0x1c1   :  { %213 = vadd.xlane.f32.xlu0 %v212_v46  ;;  %v207_v48 = vmul.f32 %v1031_v43, %v1031_v43 }
 0x1c2   :  { %v202_v49 = vsel %vm168_vm1, %v199_v44, %v184_v45 }
 0x1c3   :  { %v210_v50 = vsel %vm168_vm1, 0.0, %v207_v48  ;;  %v205_v51 = vsub.f32 %v161_v19, %v202_v49  ;;  %v225_v54 = vsel %vm168_vm1, %v207_v48, 0.0 }
 0x1c4   :  { %v215_v53 = vsel %vm172_vm2, %v210_v50, 0.0  ;;  %v230_v57 = vsel %vm172_vm2, %v225_v54, 0.0 }
 0x1c5   :  { %228 = vadd.xlane.f32.xlu0 %v227_v52  ;;  %216 = vadd.xlane.f32.xlu1 %v215_v53  ;;  %v208_v55 = vmul.f32 %v205_v51, %v205_v51 }
 0x1c7   :  { %v211_v56 = vsel %vm168_vm1, 0.0, %v208_v55  ;;  %v226_v59 = vsel %vm168_vm1, %v208_v55, 0.0 }
 0x1c8   :  { %v218_v58 = vsel %vm172_vm2, %v211_v56, 0.0  ;;  %v233_v60 = vsel %vm172_vm2, %v226_v59, 0.0 }
 0x1c9   :  { %231 = vadd.xlane.f32.xlu1 %v230_v57  ;;  %219 = vadd.xlane.f32.xlu0 %v218_v58 }
 0x1cd   :  { %234 = vadd.xlane.f32.xlu1 %v233_v60 }
 0x24e   :  { %v214_v1 = vpop.xlane.xlu0 %213 }
 0x24f   :  { %v221_v4 = vmul.f32 0.03125, %v214_v1 }
 0x252   :  { %v217_v2 = vpop.xlane.xlu1 %216  ;;  %v229_v3 = vpop.xlane.xlu0 %228 }
 0x253   :  { %v236_v5 = vmul.f32 0.03125, %v229_v3  ;;  %v222_v10 = vmul.f32 0.03125, %v217_v2 }
 0x255   :  { %v239_v6 = vsel %vm168_vm1, %v236_v5, %v221_v4 }
 0x256   :  { %v242_v8 = vadd.f32 1e-05, %v239_v6  ;;  %v232_v9 = vpop.xlane.xlu1 %231  ;;  %v220_v12 = vpop.xlane.xlu0 %219 }
 0x257   :  { %v237_v11 = vmul.f32 0.03125, %v232_v9  ;;  %v223_v16 = vmul.f32 0.03125, %v220_v12 }
 0x258   :  { %722 = vrsqrt.f32 %v242_v8 }
 0x259   :  { %v240_v13 = vsel %vm168_vm1, %v237_v11, %v222_v10 }
 0x25a   :  { %v243_v14 = vadd.f32 1e-05, %v240_v13  ;;  %v235_v15 = vpop.xlane.xlu1 %234 }
 0x25b   :  { %v238_v17 = vmul.f32 0.03125, %v235_v15 }
 0x25c   :  { %724 = vrsqrt.f32 %v243_v14 }
 0x25d   :  { %v241_v18 = vsel %vm168_vm1, %v238_v17, %v223_v16 }
 0x25e   :  { %v244_v19 = vadd.f32 1e-05, %v241_v18 }
 0x260   :  { %726 = vrsqrt.f32 %v244_v19 }
 0x262   :  { %v723_v20 = vpop.eup %722 }
 0x263   :  { %v248_v22 = vmul.f32 %v723_v20, %v1023_v35  ;;  %v643_v35 = vld [vmem:[#allocation7] ss:$0 sm:$0xff] }
 0x265   :  { %v257_v23 = vmul.f32 %v641_v21, %v248_v22 }
 0x266   :  { %v725_v24 = vpop.eup %724 }
 0x267   :  { %v249_v26 = vmul.f32 %v725_v24, %v1031_v43  ;;  %v266_v28 = vadd.f32 %v642_v25, %v257_v23 }
 0x269   :  { %v258_v27 = vmul.f32 %v641_v21, %v249_v26  ;;  %v269_v32 = vmax.f32 %v266_v28, 0.0 }
 0x26a   :  { %v727_v29 = vpop.eup %726 }
 0x26b   :  { %v267_v30 = vadd.f32 %v642_v25, %v258_v27  ;;  %v250_v31 = vmul.f32 %v727_v29, %v205_v51  ;;  %v718_v29 = vld [vmem:[%s1184_s9] sm:$0xff]  }
 0x26c   :  { %692 = vmatprep.subr.bf16.mxu0 %v718_v29 }
 0x26d   :  { %v270_v33 = vmax.f32 %v267_v30, 0.0  ;;  %v259_v34 = vmul.f32 %v641_v21, %v250_v31  ;;  %693 = vmatpush3.bf16.msra.mxu0 %v718_v29  ;;  %v719_v30 = vld [vmem:[%s1184_s9 + $0x8] sm:$0xff]   ;;  %v720_v31 = vld [vmem:[%s1184_s9 + $0x10] sm:$0xff]  }
 0x26e   :  { %694 = vmatprep.subr.bf16.mxu0 %v719_v30 }
 0x26f   :  { %v283_v36 = vpack.c.bf16 %v270_v33, %v269_v32  ;;  %v268_v37 = vadd.f32 %v642_v25, %v259_v34  ;;  %v721_v32 = vld [vmem:[%s1184_s9 + $0x18] sm:$0xff]  }
 0x271   :  { %688 = vmatprep.mubr.msk.bf16.mxu1 %vm172_vm2, %v283_v36  ;;  %v271_v38 = vmax.f32 %v268_v37, 0.0  ;;  %695 = vmatpush3.bf16.msra.mxu0 %v719_v30 }
 0x272   :  { %696 = vmatprep.subr.bf16.mxu0 %v720_v31 }
 0x273   :  { %v284_v39 = vpack.c.bf16 %v271_v38, %v271_v38 }
 0x275   :  { %689 = vmatmul.mubr.msk.bf16.vlgmr.msra.gmra.mrb[0].mxu1 %vm172_vm2, %v284_v39  ;;  %697 = vmatpush3.bf16.msra.mxu0 %v720_v31 }
 0x276   :  { %698 = vmatprep.subr.bf16.mxu0 %v721_v32 }
 0x279   :  { %699 = vmatpush3.bf16.msra.mxu0 %v721_v32 }
 0x348   :  { %v690_v40 = vpop.f32.mrb[0].mxu1 }
 0x349   :  { %v355_v41 = vpop.f32.mrb[1].mxu1  ;;  %v364_v48 = vadd.f32 %v690_v40, %v643_v35 }
 0x34a   :  { %v356_v42 = vadd.f32 %v643_v35, %v355_v41  ;;  %v691_v43 = vpop.f32.mrb[2].mxu1 }
 0x34b   :  { %v358_v44 = vpop.f32.mrb[3].mxu1  ;;  %v371_v54 = vsel %vm168_vm1, 0.0, %v364_v48  ;;  %v386_v56 = vsel %vm168_vm1, %v364_v48, 0.0 }
 0x34c   :  { %v359_v45 = vadd.f32 %v643_v35, %v358_v44  ;;  %v369_v46 = vsel %vm168_vm1, 0.0, %v356_v42  ;;  %v384_v50 = vsel %vm168_vm1, %v356_v42, 0.0  ;;  %v378_v57 = vsel %vm172_vm2, %v371_v54, 0.0 }
 0x34d   :  { %v372_v47 = vsel %vm172_vm2, %v369_v46, 0.0  ;;  %v387_v53 = vsel %vm172_vm2, %v384_v50, 0.0  ;;  %v393_v58 = vsel %vm172_vm2, %v386_v56, 0.0 }
 0x34e   :  { %373 = vadd.xlane.f32.xlu0 %v372_v47  ;;  %v370_v49 = vsel %vm168_vm1, 0.0, %v359_v45  ;;  %v385_v52 = vsel %vm168_vm1, %v359_v45, 0.0 }
 0x34f   :  { %v375_v51 = vsel %vm172_vm2, %v370_v49, 0.0  ;;  %v390_v55 = vsel %vm172_vm2, %v385_v52, 0.0  ;;  %v650_v52 = vld [vmem:[#allocation8] ss:$0 sm:$0xff] }
 0x350   :  { %376 = vadd.xlane.f32.xlu1 %v375_v51 }
 0x352   :  { %388 = vadd.xlane.f32.xlu0 %v387_v53 }
 0x354   :  { %391 = vadd.xlane.f32.xlu1 %v390_v55  ;;  %v651_v55 = vld [vmem:[%s1183_s8] ss:$0 sm:$0xff] }
 0x356   :  { %379 = vadd.xlane.f32.xlu0 %v378_v57 }
 0x358   :  { %394 = vadd.xlane.f32.xlu1 %v393_v58 }
 0x3db   :  { %v374_v59 = vpop.xlane.xlu0 %373 }
 0x3dc   :  { %v381_v62 = vmul.f32 0.03125, %v374_v59 }
 0x3dd   :  { %v377_v60 = vpop.xlane.xlu1 %376 }
 0x3de   :  { %v382_v1 = vmul.f32 0.03125, %v377_v60 }
 0x3df   :  { %v389_v61 = vpop.xlane.xlu0 %388 }
 0x3e0   :  { %v396_v63 = vmul.f32 0.03125, %v389_v61 }
 0x3e1   :  { %v392_v0 = vpop.xlane.xlu1 %391 }
 0x3e2   :  { %v399_v2 = vsel %vm168_vm1, %v396_v63, %v381_v62  ;;  %v397_v3 = vmul.f32 0.03125, %v392_v0 }
 0x3e3   :  { %v380_v4 = vpop.xlane.xlu0 %379  ;;  %v1098_v5 = vsub.f32 %v356_v42, %v399_v2 }
 0x3e4   :  { %v400_v6 = vsel %vm168_vm1, %v397_v3, %v382_v1  ;;  %v383_v11 = vmul.f32 0.03125, %v380_v4 }
 0x3e5   :  { %v395_v8 = vpop.xlane.xlu1 %394  ;;  %v405_v9 = vmul.f32 %v1098_v5, %v1098_v5  ;;  %v1104_v10 = vsub.f32 %v359_v45, %v400_v6  ;;  %v652_v6 = vld [vmem:[%s1185_s10] ss:$0 sm:$0xff]  ;;  %s870_s10 = smov [#allocation10]  }
 0x3e6   :  { %v398_v12 = vmul.f32 0.03125, %v395_v8  ;;  %s623_s12 = sshll.u32 %s870_s10, 4  ;;  %s624_s12 = int_to_ptr.vmem [resolvable:$true] %s623_s12 }
 0x3e7   :  { %v408_v13 = vsel %vm168_vm1, 0.0, %v405_v9  ;;  %v406_v14 = vmul.f32 %v1104_v10, %v1104_v10  ;;  %v423_v18 = vsel %vm168_vm1, %v405_v9, 0.0  ;;  %s834_s13 = scalar_lea.vmem %s624_s12, 384  ;;  %p839_p5 = scmp.lt.s32.totalorder %s624_s12, %s624_s12 }
 0x3e8   :  { %v401_v15 = vsel %vm168_vm1, %v398_v12, %v383_v11  ;;  %v411_v16 = vsel %vm172_vm2, %v408_v13, 0.0  ;;  %v426_v23 = vsel %vm172_vm2, %v423_v18, 0.0  ;;  %p835_p4 = scmp.ne.s32.totalorder %s624_s12, %s834_s13  ;;  %p840_p6 = scmp.lt.s32.totalorder %s834_s13, %s834_s13 }
 0x3e9   :  { %412 = vadd.xlane.f32.xlu0 %v411_v16  ;;  %v409_v17 = vsel %vm168_vm1, 0.0, %v406_v14  ;;  %v404_v19 = vsub.f32 %v364_v48, %v401_v15  ;;  %v424_v21 = vsel %vm168_vm1, %v406_v14, 0.0 }
 0x3ea   :  { %v414_v20 = vsel %vm172_vm2, %v409_v17, 0.0  ;;  %v429_v25 = vsel %vm172_vm2, %v424_v21, 0.0  ;;  %p841_p7 = por %p840_p6, %p839_p5 }
 0x3eb   :  { %415 = vadd.xlane.f32.xlu1 %v414_v20  ;;  %v407_v22 = vmul.f32 %v404_v19, %v404_v19 }
 0x3ec   :  { %p842_p8 = pnand %p841_p7, %p835_p4 }
 0x3ed   :  { %427 = vadd.xlane.f32.xlu0 %v426_v23  ;;  %v410_v24 = vsel %vm168_vm1, 0.0, %v407_v22  ;;  %v425_v26 = vsel %vm168_vm1, %v407_v22, 0.0 }
 0x3ee   :  { %v417_v27 = vsel %vm172_vm2, %v410_v24, 0.0  ;;  %v432_v28 = vsel %vm172_vm2, %v425_v26, 0.0 }
 0x3ef   :  { %430 = vadd.xlane.f32.xlu1 %v429_v25 }
 0x3f1   :  { %418 = vadd.xlane.f32.xlu0 %v417_v27 }
 0x3f3   :  { %433 = vadd.xlane.f32.xlu1 %v432_v28 }
 0x476   :  { %v413_v33 = vpop.xlane.xlu0 %412 }
 0x477   :  { %v420_v37 = vmul.f32 0.03125, %v413_v33 }
 0x478   :  { %v416_v34 = vpop.xlane.xlu1 %415 }
 0x479   :  { %v421_v35 = vmul.f32 0.03125, %v416_v34 }
 0x47a   :  { %v428_v36 = vpop.xlane.xlu0 %427 }
 0x47b   :  { %v435_v38 = vmul.f32 0.03125, %v428_v36 }
 0x47c   :  { %v431_v39 = vpop.xlane.xlu1 %430 }
 0x47d   :  { %v438_v40 = vsel %vm168_vm1, %v435_v38, %v420_v37  ;;  %v436_v41 = vmul.f32 0.03125, %v431_v39 }
 0x47e   :  { %v441_v42 = vadd.f32 1e-05, %v438_v40  ;;  %v419_v43 = vpop.xlane.xlu0 %418 }
 0x47f   :  { %v439_v44 = vsel %vm168_vm1, %v436_v41, %v421_v35  ;;  %v422_v47 = vmul.f32 0.03125, %v419_v43 }
 0x480   :  { %728 = vrsqrt.f32 %v441_v42  ;;  %v442_v45 = vadd.f32 1e-05, %v439_v44  ;;  %v434_v46 = vpop.xlane.xlu1 %433 }
 0x481   :  { %v437_v48 = vmul.f32 0.03125, %v434_v46 }
 0x482   :  { %730 = vrsqrt.f32 %v442_v45 }
 0x483   :  { %v440_v49 = vsel %vm168_vm1, %v437_v48, %v422_v47 }
 0x484   :  { %v443_v50 = vadd.f32 1e-05, %v440_v49 }
 0x486   :  { %732 = vrsqrt.f32 %v443_v50 }
 0x48a   :  { %v729_v51 = vpop.eup %728 }
 0x48b   :  { %v447_v53 = vmul.f32 %v729_v51, %v1098_v5 }
 0x48c   :  { %v731_v54 = vpop.eup %730 }
 0x48d   :  { %v448_v56 = vmul.f32 %v731_v54, %v1104_v10  ;;  %v456_v57 = vmul.f32 %v650_v52, %v447_v53 }
 0x48f   :  { %v457_v58 = vmul.f32 %v650_v52, %v448_v56  ;;  %v465_v59 = vadd.f32 %v651_v55, %v456_v57 }
 0x490   :  { %v733_v60 = vpop.eup %732 }
 0x491   :  { %v449_v61 = vmul.f32 %v733_v60, %v404_v19  ;;  %v466_v62 = vadd.f32 %v651_v55, %v457_v58  ;;  %v468_v63 = vmax.f32 %v465_v59, 0.0 }
 0x493   :  { %v469_v0 = vmax.f32 %v466_v62, 0.0  ;;  %v458_v1 = vmul.f32 %v650_v52, %v449_v61 }
 0x495   :  { %v480_v2 = vpack.c.bf16 %v469_v0, %v468_v63  ;;  %v467_v3 = vadd.f32 %v651_v55, %v458_v1 }
 0x497   :  { %700 = vmatprep.mubr.msk.bf16.mxu0 %vm172_vm2, %v480_v2  ;;  %v470_v4 = vmax.f32 %v467_v3, 0.0 }
 0x499   :  { %v481_v5 = vpack.c.bf16 %v470_v4, %v470_v4 }
 0x49b   :  { %701 = vmatmul.mubr.msk.bf16.vlgmr.msra.gmra.mrb[4].mxu0 %vm172_vm2, %v481_v5 }
 0x56e   :  { %v702_v8 = vpop.f32.mrb[4].mxu0 }
 0x56f   :  { %v561_v9 = vadd.f32 %v702_v8, %v652_v6  ;;  %v552_v10 = vpop.f32.mrb[5].mxu0 }
 0x570   :  { %v553_v11 = vadd.f32 %v652_v6, %v552_v10  ;;  %v703_v12 = vpop.f32.mrb[6].mxu0 }
 0x571   :  { %v573_v13 = vmul.f32 1.442695, %v561_v9  ;;  %v555_v14 = vpop.f32.mrb[7].mxu0  ;;  %vm568_vm5 = vcmp.gt.f32.partialorder %v561_v9, 20.0 }
 0x572   :  { %v569_v15 = vmul.f32 1.442695, %v553_v11  ;;  %v556_v16 = vadd.f32 %v652_v6, %v555_v14  ;;  %vm566_vm6 = vcmp.gt.f32.partialorder %v553_v11, 20.0 }
 0x573   :  { %734 = vpow2.f32 %v573_v13 }
 0x574   :  { %736 = vpow2.f32 %v569_v15  ;;  %v571_v17 = vmul.f32 1.442695, %v556_v16  ;;  %vm567_vm9 = vcmp.gt.f32.partialorder %v556_v16, 20.0 }
 0x576   :  { %738 = vpow2.f32 %v571_v17 }
 0x57d   :  { %v735_v18 = vpop.eup %734 }
 0x57e   :  { %v737_v19 = vpop.eup %736  ;;  %v593_v20 = vadd.f32 1.0, %v735_v18  ;;  %v596_v24 = vmul.f32 -0.5, %v735_v18  ;;  %v599_v28 = vand.u32 2147483647, %v735_v18 }
 0x57f   :  { %v575_v21 = vadd.f32 1.0, %v737_v19  ;;  %v578_v25 = vmul.f32 -0.5, %v737_v19  ;;  %v581_v30 = vand.u32 2147483647, %v737_v19 }
 0x580   :  { %v739_v22 = vpop.eup %738  ;;  %740 = vlog2.f32 %v593_v20  ;;  %v597_v26 = vadd.f32 1.0, %v596_v24  ;;  %vm600_vm4 = vcmp.lt.f32.partialorder %v599_v28, 0.0004427343  ;;  %v610_v42 = vsel %vm568_vm5, %v735_v18, %v593_v20 }
 0x581   :  { %742 = vlog2.f32 %v575_v21  ;;  %v584_v23 = vadd.f32 1.0, %v739_v22  ;;  %v587_v27 = vmul.f32 -0.5, %v739_v22  ;;  %v579_v29 = vadd.f32 1.0, %v578_v25 }
 0x582   :  { %v598_v34 = vmul.f32 %v735_v18, %v597_v26  ;;  %v590_v39 = vand.u32 2147483647, %v739_v22  ;;  %vm582_vm7 = vcmp.lt.f32.partialorder %v581_v30, 0.0004427343  ;;  %v608_v44 = vsel %vm566_vm6, %v737_v19, %v575_v21 }
 0x583   :  { %744 = vlog2.f32 %v584_v23  ;;  %v588_v36 = vadd.f32 1.0, %v587_v27  ;;  %v580_v38 = vmul.f32 %v737_v19, %v579_v29  ;;  %v609_v52 = vsel %vm567_vm9, %v739_v22, %v584_v23 }
 0x584   :  { %vm591_vm8 = vcmp.lt.f32.partialorder %v590_v39, 0.0004427343 }
 0x585   :  { %v589_v48 = vmul.f32 %v739_v22, %v588_v36 }
 0x58a   :  { %v741_v31 = vpop.eup %740 }
 0x58b   :  { %v743_v32 = vpop.eup %742  ;;  %v595_v33 = vmul.f32 0.6931472, %v741_v31 }
 0x58c   :  { %v577_v37 = vmul.f32 0.6931472, %v743_v32 }
 0x58d   :  { %v601_v35 = vsel %vm600_vm4, %v598_v34, %v595_v33  ;;  %v745_v40 = vpop.eup %744 }
 0x58e   :  { %v604_v41 = vsel %vm568_vm5, %v561_v9, %v601_v35  ;;  %v583_v43 = vsel %vm582_vm7, %v580_v38, %v577_v37  ;;  %v586_v47 = vmul.f32 0.6931472, %v745_v40 }
 0x58f   :  { %v614_v45 = vsel %vm611_vm3, %v610_v42, %v604_v41  ;;  %v602_v46 = vsel %vm566_vm6, %v553_v11, %v583_v43 }
 0x590   :  { %617 = vst [vmem:[#allocation10 + $0x10] sm:$0xff] %v614_v45  ;;  %v612_v49 = vsel %vm611_vm3, %v608_v44, %v602_v46  ;;  %v592_v50 = vsel %vm591_vm8, %v589_v48, %v586_v47 }
 0x591   :  { %615 = vst [vmem:[#allocation10] sm:$0xff] %v612_v49  ;;  %v603_v51 = vsel %vm567_vm9, %v556_v16, %v592_v50 }
 0x592   :  { %v613_v53 = vsel %vm611_vm3, %v609_v52, %v603_v51 }
 0x593   :  { %616 = vst [vmem:[#allocation10 + $0x8] sm:$0xff] %v613_v53 }
 0x594   :  { %845 = shalt.err (!%p842_p8)
}
 0x595   :  { %s846_s16 = scalar_lea.hbm %s1186_s11, 384 }
 0x596   :  { %p847_p9 = scmp.ne.s32.totalorder %s1186_s11, %s846_s16  ;;  %p850_p10 = scmp.lt.u32.totalorder %s846_s16, %s1186_s11 }
 0x598   :  { %p852_p11 = pnand %p850_p10, %p847_p9 }
 0x59a   :  { %855 = shalt.err (!%p852_p11)
}
 0x59b   :  { %s871_s1 = smov 128   ;;  %s872_s20 = smov 8  }
 0x59c   :  { %629 = dma.vmem_to_hbm [thread:$0]  %s624_s12, 384, %s1186_s11, [#allocation4], %s871_s1, %s871_s1, %s872_s20  }
 0x59d   :  { %862 = dma.done.wait [#allocation4], 384  }
 0x59e   :  { %863 = vsyncadd [#allocation4], 4294966912 }
 0x59f   :  { %633 = vsyncpa [#allocation3], 1 }
 0x5a0   :  { %634 = vsyncpa [#allocation6], 1 }
 0x5a1   :  { %635 = vsyncpa [#allocation9], 1 }
 0x5a2   :  { %636 = vsyncpa [#allocation4], 1 }

</bundles_post_ra>
